<compile_context>
chip_gen: v7x
topology: tpu7x:2x2x1
jax: 0.10.0
libtpu: 0.0.40
codegen_flags: <defaults>
</compile_context>

<pallas_src>
import math

import jax
import jax.numpy as jnp
from jax.experimental import pallas as pl
from jax.experimental.pallas import tpu as pltpu

# ----------------------------- module config ---------------------------------
# Same structure as FlowField.__init__ defaults; hash-grid sizes shrunk for a small
# self-contained example (they are constructor arguments in the module).
N_LEVELS = 8
N_FEATURES_PER_LEVEL = 8
NUM_BASIS = 4
FPB = N_FEATURES_PER_LEVEL // NUM_BASIS            # features per basis per level = 2
GRID_FEAT_DIM = N_LEVELS * N_FEATURES_PER_LEVEL    # 64  (tcnn n_output_dims)
MLP_IN_DIM = GRID_FEAT_DIM // NUM_BASIS            # 16  (self.input_dim)
HIDDEN_DIM = 64
OUT_DIM = 6
NUM_LAYERS = 3
LOG2_HASHMAP_SIZE = 14
BASE_RESOLUTION = 16
MAX_RESOLUTION = 512
# use_freq defaults to False -> FreqEmbed branch is not exercised.


# ------------------------------ Pallas kernel --------------------------------
def flowfield_mlp_kernel(h_ref, w0_ref, w1_ref, w2_ref, o_ref):
    """3 back-to-back bf16 MXU matmuls (f32 accumulation) over a row tile.

    h_ref  : VMEM bf16[TN, 16]   temporally-blended grid features (interpT output)
    w0_ref : VMEM bf16[16, 64]
    w1_ref : VMEM bf16[64, 64]
    w2_ref : VMEM bf16[64, 6]
    o_ref  : VMEM f32 [TN, 6]
    """
    z = jnp.dot(h_ref[...], w0_ref[...], preferred_element_type=jnp.float32)
    z = jnp.maximum(z, 0.0)                                   # ReLU in f32 (v5e VPU has no bf16)
    z = jnp.dot(z.astype(jnp.bfloat16), w1_ref[...],
                preferred_element_type=jnp.float32)
    z = jnp.maximum(z, 0.0)
    o_ref[...] = jnp.dot(z.astype(jnp.bfloat16), w2_ref[...],
                         preferred_element_type=jnp.float32)


def _pick_tile_n(n_rows):
    """Big tiles amortize the ~0.35us per-grid-step overhead.  Keep >=4 grid steps before
    shrinking so v7x's 2 TensorCores each pipeline >=2 steps (1 TC on v5e/v6e is fine too).
    VMEM at 2048 rows is ~3 MB (double-buffered bf16[2048,16->128 lanes] input +
    f32[2048,6->128 lanes] output), well inside every generation's scoped default."""
    tile = 2048
    while tile > 256 and n_rows < 4 * tile:
        tile //= 2
    # Never make the tile much larger than the problem; keep the sublane dim a multiple of 8.
    return max(8, min(tile, ((n_rows + 7) // 8) * 8))


def flowfield_mlp_pallas(h_bf16, w0, w1, w2, *, tile_n=None):
    """h_bf16: [N, 16] temporally-blended features (bf16).  w0/w1/w2: f32 [in, out].
    Returns flow [N, 6] f32.  No pad/slice: ragged last block is masked by Pallas."""
    N = h_bf16.shape[0]
    if tile_n is None:
        tile_n = _pick_tile_n(N)

    w0b = w0.astype(jnp.bfloat16)
    w1b = w1.astype(jnp.bfloat16)
    w2b = w2.astype(jnp.bfloat16)

    return pl.pallas_call(
        flowfield_mlp_kernel,
        out_shape=jax.ShapeDtypeStruct((N, OUT_DIM), jnp.float32),
        grid=(pl.cdiv(N, tile_n),),
        in_specs=[
            pl.BlockSpec((tile_n, MLP_IN_DIM), lambda i: (i, 0)),        # features
            pl.BlockSpec((MLP_IN_DIM, HIDDEN_DIM), lambda i: (0, 0)),    # w0
            pl.BlockSpec((HIDDEN_DIM, HIDDEN_DIM), lambda i: (0, 0)),    # w1
            pl.BlockSpec((HIDDEN_DIM, OUT_DIM), lambda i: (0, 0)),       # w2
        ],
        out_specs=pl.BlockSpec((tile_n, OUT_DIM), lambda i: (i, 0)),
        compiler_params=pltpu.CompilerParams(dimension_semantics=("parallel",)),
    )(h_bf16.astype(jnp.bfloat16), w0b, w1b, w2b)


# --------------------- temporal basis (Lagrange) coefficients -----------------
def lagrange_coeffs(t):
    """Lagrange basis values c_j(t) on T = [0, 1/3, 2/3, 1] (interpT coefficients)."""
    T = [i / (NUM_BASIS - 1) for i in range(NUM_BASIS)]
    cs = []
    for j in range(NUM_BASIS):
        c = 1.0
        for m in range(NUM_BASIS):
            if m != j:
                c = c * (t - T[m]) / (T[j] - T[m])
        cs.append(jnp.asarray(c, jnp.float32))
    return jnp.stack(cs)                                       # [NUM_BASIS]


# --------------------- hash-grid encoding (plain JAX glue) --------------------
# TODO(synk): tcnn.Encoding HashGrid is a data-dependent hash-table gather; fusing it into
# the Pallas kernel (table resident in VMEM) would remove the remaining [N,16] HBM
# intermediate, but Mosaic lacks a robust vectorized dynamic gather from a large VMEM table.
def _hash_grid_level_feats(xyz, table, lvl):
    """Trilinear hash-grid features for one level: xyz [N,3] in [0,1] -> [N, F] f32."""
    hashmap_size = table.shape[1]
    per_level_scale = 2.0 ** (math.log2(MAX_RESOLUTION / BASE_RESOLUTION) / (N_LEVELS - 1))
    primes = jnp.array([1, 2654435761, 805459861], dtype=jnp.uint32)
    scale = BASE_RESOLUTION * (per_level_scale ** lvl) - 1.0
    res = int(math.ceil(scale)) + 1
    pos = xyz * scale + 0.5
    pos_floor = jnp.floor(pos)
    w = pos - pos_floor                                        # trilinear weights [N, 3]
    base = pos_floor.astype(jnp.int32)
    dense = (res + 1) ** 3 <= hashmap_size
    feats = jnp.zeros((xyz.shape[0], N_FEATURES_PER_LEVEL), jnp.float32)
    for corner in range(8):
        offs = jnp.array([(corner >> d) & 1 for d in range(3)], jnp.int32)
        idx = (base + offs[None, :]).astype(jnp.uint32)
        if dense:
            stride = jnp.array([1, res + 1, (res + 1) ** 2], jnp.uint32)
            flat = jnp.sum(idx * stride[None, :], axis=-1) % hashmap_size
        else:
            hp = idx * primes[None, :]
            flat = (hp[:, 0] ^ hp[:, 1] ^ hp[:, 2]) % hashmap_size
        corner_w = jnp.prod(jnp.where(offs[None, :] == 1, w, 1.0 - w), axis=-1)
        feats = feats + corner_w[:, None] * table[lvl, flat.astype(jnp.int32)]
    return feats                                               # [N, F]


def hash_grid_encode(xyz, table):
    """Full tcnn-order (level-major) features [N, 64] f32 (reference path only)."""
    return jnp.concatenate(
        [_hash_grid_level_feats(xyz, table, l) for l in range(N_LEVELS)], axis=-1)


def hash_grid_encode_interp(xyz, t, table):
    """Hash-grid encode with interpT fused per level -> [N, 16] f32.
    This is what crosses HBM (as bf16) instead of the [N, 64] intermediate."""
    c = lagrange_coeffs(t)                                     # [NUM_BASIS]
    outs = []
    for lvl in range(N_LEVELS):
        feats = _hash_grid_level_feats(xyz, table, lvl)        # [N, 8]
        # torch.chunk along the feature dim: chunk j == features [j*FPB:(j+1)*FPB]
        blended = jnp.sum(feats.reshape(-1, NUM_BASIS, FPB) * c[None, :, None], axis=1)
        outs.append(blended)                                   # [N, FPB]
    return jnp.concatenate(outs, axis=-1)                      # [N, 16]


# ----------------------------- parameter init ---------------------------------
def init_params(key):
    k_tab, k0, k1, k2 = jax.random.split(key, 4)
    # tcnn hash-grid params: uniform(-1e-4, 1e-4)
    table = jax.random.uniform(
        k_tab, (N_LEVELS, 2 ** LOG2_HASHMAP_SIZE, N_FEATURES_PER_LEVEL),
        jnp.float32, -1e-4, 1e-4)
    # nn.Linear(bias=False) default init: U(-1/sqrt(fan_in), 1/sqrt(fan_in)),
    # torch weight layout [out, in]; last layer overridden with N(0, 0.001).
    w0 = jax.random.uniform(k0, (HIDDEN_DIM, MLP_IN_DIM), jnp.float32,
                            -1.0 / math.sqrt(MLP_IN_DIM), 1.0 / math.sqrt(MLP_IN_DIM))
    w1 = jax.random.uniform(k1, (HIDDEN_DIM, HIDDEN_DIM), jnp.float32,
                            -1.0 / math.sqrt(HIDDEN_DIM), 1.0 / math.sqrt(HIDDEN_DIM))
    w2 = jax.random.normal(k2, (OUT_DIM, HIDDEN_DIM), jnp.float32) * 0.001
    # transpose to [in, out] so the kernel computes x @ W  ( == x @ W_torch.T )
    return table, w0.T, w1.T, w2.T


# ------------------------------- full forward ---------------------------------
def flowfield_forward(xt, table, w0, w1, w2):
    xyz = xt[:, :3]
    t = xt[0, 3]                           # NOTE: single shared scalar time, as in FlowField.forward
    # interpT fused into the encode epilogue; only [N,16] bf16 crosses HBM.
    h = hash_grid_encode_interp(xyz, t, table).astype(jnp.bfloat16)
    return flowfield_mlp_pallas(h, w0, w1, w2)


# ------------------------------- references -----------------------------------
def reference_flowfield(xt, table, w0, w1, w2):
    """Pure-JAX f32 replica of the exact module semantics (encode -> interpT -> MLP)."""
    hi = jax.lax.Precision.HIGHEST
    xyz = xt[:, :3]
    t = xt[0, 3]
    g = hash_grid_encode(xyz, table)                           # [N, 64] f32
    x = g.reshape(-1, N_LEVELS, N_FEATURES_PER_LEVEL)
    chunks = [x[..., j * FPB:(j + 1) * FPB] for j in range(NUM_BASIS)]
    c = lagrange_coeffs(t)
    h = sum(c[j] * chunks[j] for j in range(NUM_BASIS)).reshape(-1, MLP_IN_DIM)
    z = jnp.maximum(jnp.dot(h, w0, precision=hi), 0.0)
    z = jnp.maximum(jnp.dot(z, w1, precision=hi), 0.0)
    return jnp.dot(z, w2, precision=hi)


def reference_kernel_numerics(h_bf16, w0, w1, w2):
    """Pure-JAX replica mirroring the kernel's bf16-operand / f32-accumulate path."""
    hi = jax.lax.Precision.HIGHEST
    w0b = w0.astype(jnp.bfloat16).astype(jnp.float32)
    w1b = w1.astype(jnp.bfloat16).astype(jnp.float32)
    w2b = w2.astype(jnp.bfloat16).astype(jnp.float32)
    z = jnp.maximum(jnp.dot(h_bf16.astype(jnp.float32), w0b, precision=hi), 0.0)
    z = jnp.maximum(jnp.dot(z.astype(jnp.bfloat16).astype(jnp.float32), w1b, precision=hi), 0.0)
    return jnp.dot(z.astype(jnp.bfloat16).astype(jnp.float32), w2b, precision=hi)


def _rel_err(a, b):
    a = jnp.asarray(a, jnp.float32)
    b = jnp.asarray(b, jnp.float32)
    return float(jnp.linalg.norm(a - b) / (jnp.linalg.norm(b) + 1e-30))


if __name__ == "__main__":
    key = jax.random.PRNGKey(0)
    k_in, k_param = jax.random.split(key)

    # N deliberately not a multiple of the tile so the ragged-last-block masking is exercised.
    N = 333
    xyz = jax.random.uniform(k_in, (N, 3), jnp.float32)          # coords in [0,1]
    t_col = jnp.full((N, 1), 0.4, jnp.float32)                   # shared time
    xt = jnp.concatenate([xyz, t_col], axis=-1)                  # [N, 4]

    table, w0, w1, w2 = init_params(k_param)

    flow = jax.jit(flowfield_forward)(xt, table, w0, w1, w2)
    flow = jax.block_until_ready(flow)
    assert flow.shape == (N, OUT_DIM) and flow.dtype == jnp.float32
    assert bool(jnp.all(jnp.isfinite(flow)))

    # Features exactly as the kernel sees them (blended, bf16 through HBM).
    h_bf16 = jax.jit(
        lambda a, tt, b: hash_grid_encode_interp(a, tt, b).astype(jnp.bfloat16)
    )(xyz, xt[0, 3], table)

    # Tight check vs a reference mirroring the kernel's bf16/f32 numerics.
    ref_tight = reference_kernel_numerics(h_bf16, w0, w1, w2)
    assert _rel_err(flow, ref_tight) < 5e-3, _rel_err(flow, ref_tight)

    # Check vs exact f32 module semantics (covers bf16 feature/weight rounding ~<1%).
    ref_exact = reference_flowfield(xt, table, w0, w1, w2)
    assert _rel_err(flow, ref_exact) < 3e-2, _rel_err(flow, ref_exact)

    print("KERNEL_OK")
</pallas_src>

<mosaic_0001>
module attributes {stable_mosaic.version = 11 : i64} {
  func.func @flowfield_mlp_kernel(%arg0: i32, %arg1: memref<256x16xbf16, #tpu.memory_space<vmem>>, %arg2: memref<16x64xbf16, #tpu.memory_space<vmem>>, %arg3: memref<64x64xbf16, #tpu.memory_space<vmem>>, %arg4: memref<64x6xbf16, #tpu.memory_space<vmem>>, %arg5: memref<256x6xf32, #tpu.memory_space<vmem>>) attributes {dimension_semantics = [#tpu.dimension_semantics<parallel>], iteration_bounds = array<i64: 2>, scalar_prefetch = 0 : i64, scratch_operands = 0 : i64, tpu.core_type = #tpu.core_type<tc>, window_params = [{transform_indices = @transform_0, window_bounds = array<i64: 256, 16>}, {pipeline_mode = #tpu.pipeline_mode<synchronous>, transform_indices = @transform_1, window_bounds = array<i64: 16, 64>}, {pipeline_mode = #tpu.pipeline_mode<synchronous>, transform_indices = @transform_2, window_bounds = array<i64: 64, 64>}, {pipeline_mode = #tpu.pipeline_mode<synchronous>, transform_indices = @transform_3, window_bounds = array<i64: 64, 6>}, {transform_indices = @transform_4, window_bounds = array<i64: 256, 6>}]} {
    %c0 = arith.constant 0 : index
    %c0_0 = arith.constant 0 : index
    %0 = vector.load %arg1[%c0, %c0_0] : memref<256x16xbf16, #tpu.memory_space<vmem>>, vector<256x16xbf16>
    %c0_1 = arith.constant 0 : index
    %c0_2 = arith.constant 0 : index
    %1 = vector.load %arg2[%c0_1, %c0_2] : memref<16x64xbf16, #tpu.memory_space<vmem>>, vector<16x64xbf16>
    %cst = arith.constant dense<0.000000e+00> : vector<256x64xf32>
    %2 = tpu.matmul %0, %1, %cst {dimension_numbers = #tpu.dot_dimension_numbers<[1], [0], [0], [1], [0, 0, 1, 1], [], []>} : vector<256x16xbf16>, vector<16x64xbf16>, vector<256x64xf32> -> vector<256x64xf32>
    %cst_3 = arith.constant 0.000000e+00 : f32
    %3 = vector.broadcast %cst_3 : f32 to vector<256x64xf32>
    %4 = arith.maximumf %2, %3 : vector<256x64xf32>
    %5 = arith.truncf %4 : vector<256x64xf32> to vector<256x64xbf16>
    %c0_4 = arith.constant 0 : index
    %c0_5 = arith.constant 0 : index
    %6 = vector.load %arg3[%c0_4, %c0_5] : memref<64x64xbf16, #tpu.memory_space<vmem>>, vector<64x64xbf16>
    %cst_6 = arith.constant dense<0.000000e+00> : vector<256x64xf32>
    %7 = tpu.matmul %5, %6, %cst_6 {dimension_numbers = #tpu.dot_dimension_numbers<[1], [0], [0], [1], [0, 0, 1, 1], [], []>} : vector<256x64xbf16>, vector<64x64xbf16>, vector<256x64xf32> -> vector<256x64xf32>
    %cst_7 = arith.constant 0.000000e+00 : f32
    %8 = vector.broadcast %cst_7 : f32 to vector<256x64xf32>
    %9 = arith.maximumf %7, %8 : vector<256x64xf32>
    %10 = arith.truncf %9 : vector<256x64xf32> to vector<256x64xbf16>
    %c0_8 = arith.constant 0 : index
    %c0_9 = arith.constant 0 : index
    %11 = vector.load %arg4[%c0_8, %c0_9] : memref<64x6xbf16, #tpu.memory_space<vmem>>, vector<64x6xbf16>
    %cst_10 = arith.constant dense<0.000000e+00> : vector<256x6xf32>
    %12 = tpu.matmul %10, %11, %cst_10 {dimension_numbers = #tpu.dot_dimension_numbers<[1], [0], [0], [1], [0, 0, 1, 1], [], []>} : vector<256x64xbf16>, vector<64x6xbf16>, vector<256x6xf32> -> vector<256x6xf32>
    %c0_11 = arith.constant 0 : index
    %c0_12 = arith.constant 0 : index
    %13 = vector.load %arg5[%c0_11, %c0_12] : memref<256x6xf32, #tpu.memory_space<vmem>>, vector<256x6xf32>
    tpu.vector_store %arg5[%c0_11, %c0_12], %12 {strides = array<i32>} : memref<256x6xf32, #tpu.memory_space<vmem>>, vector<256x6xf32>,
    return
  }
  func.func @transform_0(%arg0: i32) -> (i32, i32) {
    %c0_i32 = arith.constant 0 : i32
    %c0_i32_0 = arith.constant 0 : i32
    return %arg0, %c0_i32 : i32, i32
  }
  func.func @transform_1(%arg0: i32) -> (i32, i32) {
    %c0_i32 = arith.constant 0 : i32
    %c0_i32_0 = arith.constant 0 : i32
    %c0_i32_1 = arith.constant 0 : i32
    return %c0_i32, %c0_i32_0 : i32, i32
  }
  func.func @transform_2(%arg0: i32) -> (i32, i32) {
    %c0_i32 = arith.constant 0 : i32
    %c0_i32_0 = arith.constant 0 : i32
    %c0_i32_1 = arith.constant 0 : i32
    return %c0_i32, %c0_i32_0 : i32, i32
  }
  func.func @transform_3(%arg0: i32) -> (i32, i32) {
    %c0_i32 = arith.constant 0 : i32
    %c0_i32_0 = arith.constant 0 : i32
    %c0_i32_1 = arith.constant 0 : i32
    return %c0_i32, %c0_i32_0 : i32, i32
  }
  func.func @transform_4(%arg0: i32) -> (i32, i32) {
    %c0_i32 = arith.constant 0 : i32
    %c0_i32_0 = arith.constant 0 : i32
    return %arg0, %c0_i32 : i32, i32
  }
}

</mosaic_0001>

<bundles_post_ra>
// kernel: flowfield_forward.1
= control target key start
LH: loop header
LB: loop body
LE: loop exit
PB: predicated region body
PF: predicated region fallthrough
CT: control target
= control target key end

     0   :  { %s2000_s15 = smov 0   ;;  %s2002_s16 = smov 0   ;;  %s2336_s0 = inlined_call_operand.vmem [shape: bf16[333,16], index: 0, kind: input, shape index: {}]   ;;  %s2337_s1 = inlined_call_operand.vmem [shape: bf16[16,64], index: 1, kind: input, shape index: {}]   ;;  %s2338_s2 = inlined_call_operand.vmem [shape: bf16[64,64], index: 2, kind: input, shape index: {}]   ;;  %s2339_s3 = inlined_call_operand.vmem [shape: bf16[64,6], index: 3, kind: input, shape index: {}]   ;;  %s2340_s4 = inlined_call_operand.vmem [shape: f32[333,6], index: 4, kind: output, shape index: {}]  }
   0x1   :  { %s2004_s17 = smov 0  }
   0x2 LB: > { %s2013_s18 = sadd.s32 4294967295, %s1941_s17   ;;  %s2015_s19 = sadd.s32 1, %s1941_s17   ;;  %s1941_s17 = sphi %s2004_s17, %s2349_s17   ;;  %s1937_s16 = sphi %s2002_s16, %s2348_s16   ;;  %s1933_s15 = sphi %s2000_s15, %s2347_s15  }
   0x3   : > { %s107_s20 = ssub.s32 %s1941_s17, %s2015_s19  ;;  %s110_s21 = sadd.s32 1, %s1937_s16 }
   0x4   : > { %p108_p0 = scmp.eq.s32.totalorder %s107_s20, 0  ;;  %p120_p1 = scmp.ne.s32.totalorder %s1937_s16, %s1933_s15 }
   0x5   : > { %p121_p2 = scmp.eq.s32.totalorder %s2013_s18, 1  ;;  %p1504_p3 = scmp.ge.s32.totalorder %s1941_s17, 1 }
   0x6   : > { %s2023_s22 = scalar_select %p108_p0, %s1937_s16, %s110_s21  }
   0x7   : > { %p2025_p4 = por %p121_p2, %p120_p1  ;;  %p171_p5 = scmp.lt.s32.totalorder %s1941_s17, 3 }
   0x9   : > { %p172_p6 = pnand %p1504_p3, %p171_p5 }
   0xa   : > { %v1862_v0 = vld [vmem:[%s2337_s1] sm:$0xff] (!%p172_p6)   ;;  %s2033_s26 = sshll.u32 (!%p172_p6), %s2013_s18, 5  ;;  %vm340_vm0 = vcmask (!%p172_p6), 130048   ;;  %v1880_v8 = vld [vmem:[%s2338_s2 + $0x8] sm:$0xff] (!%p172_p6)   ;;  %v1881_v11 = vld [vmem:[%s2338_s2 + $0x10] sm:$0xff] (!%p172_p6)   ;;  %vm630_vm1 = vcmask (!%p172_p6), 523264  }
   0xb   : > { %175 = sbr.rel (%p172_p6) target bundleno = 792 (0x318), region = 36  ;;  %p205_p7 = scmp.lt.s32.totalorder (!%p172_p6), %s2033_s26, 41  ;;  %1658 = vmatprep.subr.bf16.mxu0 (!%p172_p6), %v1862_v0  ;;  %1772 = vmatprep.subr.bf16.mxu1 (!%p172_p6), %v1862_v0  ;;  %v1879_v1 = vld [vmem:[%s2338_s2] sm:$0xff] (!%p172_p6)   ;;  %v1882_v20 = vld [vmem:[%s2338_s2 + $0x18] sm:$0xff] (!%p172_p6)   ;;  %v1884_v22 = vld [vmem:[%s2339_s3 + $0x8] sm:$0xff] (!%p172_p6)   ;;  %vm1129_vm2 = vcmask (!%p172_p6), 48128  }
   0xc   : > { %1659 = vmatpush3.bf16.msra.mxu0 (!%p172_p6), %v1862_v0  ;;  %1773 = vmatpush3.bf16.msra.mxu1 (!%p172_p6), %v1862_v0  ;;  %v1883_v21 = vld [vmem:[%s2339_s3] sm:$0xff] (!%p172_p6)   ;;  %v1885_v23 = vld [vmem:[%s2339_s3 + $0x10] sm:$0xff] (!%p172_p6)  }
   0xd   : > { %1692 = vmatprep.subr.bf16.mxu1 (!%p172_p6), %v1879_v1  ;;  %1732 = vmatprep.subr.bf16.mxu0 (!%p172_p6), %v1883_v21 }
  0x12   : > { %s206_s29 = scalar_select %p205_p7, %s2033_s26, 41 }
  0x13   : > { %s1598_s6 = sshll.u32 (%p2025_p4), %s2013_s18, 8 }
  0x14   : > { %s1507_s30 = sshll.u32 %s206_s29, 2  ;;  %s197_s29 = sand.u32 1, %s1933_s15  }
  0x15   : > { %s2043_s7 = scalar_lea.vmem %s2336_s0, %s1507_s30  ;;  %s1505_s30 = sshll.u32 %s197_s29, 8 }
  0x16   : > { %v1863_v2 = vld [vmem:[%s2043_s7] sm:$0xff]   ;;  %v1864_v3 = vld [vmem:[%s2043_s7 + $0x8] sm:$0xff]   ;;  %v1865_v4 = vld [vmem:[%s2043_s7 + $0x10] sm:$0xff]   ;;  %s2131_s5 = scalar_lea.vmem [#allocation2], %s1505_s30   ;;  %s1170_s15 = ssub.s32 (%p2025_p4), 42, %s2033_s26 }
  0x17   : > { %1660 = vmatprep.mubr.msk.bf16.mxu0 %vm340_vm0, %v1863_v2  ;;  %v1866_v5 = vld [vmem:[%s2043_s7 + $0x18] sm:$0xff]   ;;  %v1867_v6 = vld [vmem:[%s2043_s7 + $0x20] sm:$0xff]   ;;  %v1872_v9 = vld [vmem:[%s2043_s7 + $0x48] sm:$0xff]   ;;  %p1171_p8 = scmp.lt.s32.totalorder (%p2025_p4), %s1170_s15, 32  ;;  %s2204_s9 = scalar_lea.vmem (%p2025_p4), %s2340_s4, %s1598_s6  }
  0x18   : > { %1661 = vmatmul.mubr.msk.bf16.vlgmr.msra.gmra.mrb[0].mxu0 %vm340_vm0, %v1864_v3  ;;  %v1871_v7 = vld [vmem:[%s2043_s7 + $0x40] sm:$0xff]   ;;  %v1873_v10 = vld [vmem:[%s2043_s7 + $0x50] sm:$0xff]   ;;  %v1868_v12 = vld [vmem:[%s2043_s7 + $0x28] sm:$0xff]  }
  0x19   : > { %1664 = vmatprep.mubr.msk.bf16.mxu0 %vm340_vm0, %v1865_v4  ;;  %1676 = vmatprep.mubr.msk.bf16.mxu1 %vm340_vm0, %v1871_v7  ;;  %v1869_v13 = vld [vmem:[%s2043_s7 + $0x30] sm:$0xff]   ;;  %v1874_v14 = vld [vmem:[%s2043_s7 + $0x58] sm:$0xff]   ;;  %v1875_v15 = vld [vmem:[%s2043_s7 + $0x60] sm:$0xff]  }
  0x1a   : > { %1677 = vmatmul.mubr.msk.bf16.vlgmr.msra.gmra.mrb[0].mxu1 %vm340_vm0, %v1872_v9  ;;  %v1870_v16 = vld [vmem:[%s2043_s7 + $0x38] sm:$0xff]   ;;  %v1876_v17 = vld [vmem:[%s2043_s7 + $0x68] sm:$0xff]   ;;  %v1877_v18 = vld [vmem:[%s2043_s7 + $0x70] sm:$0xff]   ;;  %1733 = vmatpush3.bf16.msra.mxu0 %v1883_v21 }
  0x1b   : > { %1680 = vmatprep.mubr.msk.bf16.mxu1 %vm340_vm0, %v1873_v10  ;;  %1693 = vmatpush3.bf16.msra.mxu1 %v1879_v1  ;;  %v1878_v19 = vld [vmem:[%s2043_s7 + $0x78] sm:$0xff]  }
  0x1c   : > { %1694 = vmatprep.subr.bf16.mxu1 %v1880_v8  ;;  %1734 = vmatprep.subr.bf16.mxu0 %v1884_v22 }
  0x1e   : > { %1735 = vmatpush3.bf16.msra.mxu0 %v1884_v22 }
  0x1f   : > { %1695 = vmatpush3.bf16.msra.mxu1 %v1880_v8  ;;  %1736 = vmatprep.subr.bf16.mxu0 %v1885_v23 }
  0x20   : > { %1665 = vmatmul.mubr.msk.bf16.gmra.mrb[4].mxu0 %vm340_vm0, %v1866_v5  ;;  %1696 = vmatprep.subr.bf16.mxu1 %v1881_v11 }
  0x21   : > { %1668 = vmatprep.mubr.msk.bf16.mxu0 %vm340_vm0, %v1867_v6 }
  0x22   : > { %1681 = vmatmul.mubr.msk.bf16.gmra.mrb[4].mxu1 %vm340_vm0, %v1874_v14  ;;  %1737 = vmatpush3.bf16.msra.mxu0 %v1885_v23 }
  0x23   : > { %1684 = vmatprep.mubr.msk.bf16.mxu1 %vm340_vm0, %v1875_v15  ;;  %1697 = vmatpush3.bf16.msra.mxu1 %v1881_v11 }
  0x24   : > { %1698 = vmatprep.subr.bf16.mxu1 %v1882_v20 }
  0x27   : > { %1699 = vmatpush3.bf16.msra.mxu1 %v1882_v20 }
  0x28   : > { %1669 = vmatmul.mubr.msk.bf16.gmra.mrb[8].mxu0 %vm340_vm0, %v1868_v12 }
  0x29   : > { %1672 = vmatprep.mubr.msk.bf16.mxu0 %vm340_vm0, %v1869_v13 }
  0x2a   : > { %1685 = vmatmul.mubr.msk.bf16.gmra.mrb[8].mxu1 %vm340_vm0, %v1876_v17 }
  0x2b   : > { %1688 = vmatprep.mubr.msk.bf16.mxu1 %vm340_vm0, %v1877_v18 }
  0x30   : > { %1673 = vmatmul.mubr.msk.bf16.gmra.mrb[12].mxu0 %vm340_vm0, %v1870_v16 }
  0x32   : > { %1689 = vmatmul.mubr.msk.bf16.gmra.mrb[12].mxu1 %vm340_vm0, %v1878_v19 }
  0xeb   : > { %v1662_v24 = vpop.f32.mrb[0].mxu0 }
  0xec   : > { %v423_v25 = vpop.f32.mrb[1].mxu0  ;;  %v552_v27 = vmax.f32 %v1662_v24, 0.0 }
  0xed   : > { %v1663_v26 = vpop.f32.mrb[2].mxu0  ;;  %v550_v30 = vmax.f32 %v423_v25, 0.0  ;;  %v1678_v35 = vpop.f32.mrb[0].mxu1 }
  0xee   : > { %v553_v28 = vmax.f32 %v1663_v26, 0.0  ;;  %v426_v29 = vpop.f32.mrb[3].mxu0  ;;  %v568_v37 = vmax.f32 %v1678_v35, 0.0  ;;  %v487_v38 = vpop.f32.mrb[1].mxu1 }
  0xef   : > { %v551_v31 = vmax.f32 %v426_v29, 0.0  ;;  %v566_v40 = vmax.f32 %v487_v38, 0.0  ;;  %v1679_v41 = vpop.f32.mrb[2].mxu1 }
  0xf0   : > { %v583_v32 = vpack.c.bf16 %v553_v28, %v552_v27  ;;  %v569_v45 = vmax.f32 %v1679_v41, 0.0  ;;  %v490_v46 = vpop.f32.mrb[3].mxu1 }
  0xf1   : > { %v582_v33 = vpack.c.bf16 %v551_v31, %v550_v30  ;;  %v567_v49 = vmax.f32 %v490_v46, 0.0 }
  0xf2   : > { %v591_v51 = vpack.c.bf16 %v569_v45, %v568_v37 }
  0xf3   : > { %v1666_v34 = vpop.f32.mrb[4].mxu0  ;;  %1700 = vmatprep.mubr.msk.bf16.mxu1 %vm630_vm1, %v582_v33  ;;  %v590_v53 = vpack.c.bf16 %v567_v49, %v566_v40  ;;  %v1886_v40 = vld [vmem:[%s2339_s3 + $0x18] sm:$0xff]  }
  0xf4   : > { %v439_v36 = vpop.f32.mrb[5].mxu0  ;;  %1701 = vmatmul.mubr.msk.bf16.vlgmr.msra.gmra.mrb[16].mxu1 %vm630_vm1, %v583_v32  ;;  %v556_v42 = vmax.f32 %v1666_v34, 0.0  ;;  %1738 = vmatprep.subr.bf16.mxu0 %v1886_v40 }
  0xf5   : > { %v1667_v39 = vpop.f32.mrb[6].mxu0  ;;  %v554_v47 = vmax.f32 %v439_v36, 0.0  ;;  %v1682_v55 = vpop.f32.mrb[4].mxu1  ;;  %1739 = vmatpush3.bf16.msra.mxu0 %v1886_v40 }
  0xf6   : > { %v557_v43 = vmax.f32 %v1667_v39, 0.0  ;;  %v442_v44 = vpop.f32.mrb[7].mxu0  ;;  %v572_v57 = vmax.f32 %v1682_v55, 0.0  ;;  %v503_v58 = vpop.f32.mrb[5].mxu1 }
  0xf7   : > { %v555_v48 = vmax.f32 %v442_v44, 0.0  ;;  %v570_v60 = vmax.f32 %v503_v58, 0.0  ;;  %v1683_v61 = vpop.f32.mrb[6].mxu1 }
  0xf8   : > { %v585_v50 = vpack.c.bf16 %v557_v43, %v556_v42  ;;  %v573_v1 = vmax.f32 %v1683_v61, 0.0  ;;  %v506_v2 = vpop.f32.mrb[7].mxu1 }
  0xf9   : > { %v584_v52 = vpack.c.bf16 %v555_v48, %v554_v47  ;;  %v571_v5 = vmax.f32 %v506_v2, 0.0 }
  0xfa   : > { %v593_v7 = vpack.c.bf16 %v573_v1, %v572_v57 }
  0xfb   : > { %v1670_v54 = vpop.f32.mrb[8].mxu0  ;;  %1704 = vmatprep.mubr.msk.bf16.mxu1 %vm630_vm1, %v584_v52  ;;  %v592_v9 = vpack.c.bf16 %v571_v5, %v570_v60 }
  0xfc   : > { %v455_v56 = vpop.f32.mrb[9].mxu0  ;;  %1705 = vmatmul.mubr.msk.bf16.gmra.mrb[20].mxu1 %vm630_vm1, %v585_v50  ;;  %v560_v62 = vmax.f32 %v1670_v54, 0.0 }
  0xfd   : > { %v1671_v59 = vpop.f32.mrb[10].mxu0  ;;  %v558_v3 = vmax.f32 %v455_v56, 0.0  ;;  %v1686_v11 = vpop.f32.mrb[8].mxu1 }
  0xfe   : > { %v561_v63 = vmax.f32 %v1671_v59, 0.0  ;;  %v458_v0 = vpop.f32.mrb[11].mxu0  ;;  %v576_v13 = vmax.f32 %v1686_v11, 0.0  ;;  %v519_v14 = vpop.f32.mrb[9].mxu1 }
  0xff   : > { %v559_v4 = vmax.f32 %v458_v0, 0.0  ;;  %v574_v16 = vmax.f32 %v519_v14, 0.0  ;;  %v1687_v17 = vpop.f32.mrb[10].mxu1 }
 0x100   : > { %v587_v6 = vpack.c.bf16 %v561_v63, %v560_v62  ;;  %v577_v21 = vmax.f32 %v1687_v17, 0.0  ;;  %v522_v22 = vpop.f32.mrb[11].mxu1 }
 0x101   : > { %v586_v8 = vpack.c.bf16 %v559_v4, %v558_v3  ;;  %v575_v25 = vmax.f32 %v522_v22, 0.0 }
 0x102   : > { %v595_v27 = vpack.c.bf16 %v577_v21, %v576_v13 }
 0x103   : > { %v1674_v10 = vpop.f32.mrb[12].mxu0  ;;  %1708 = vmatprep.mubr.msk.bf16.mxu1 %vm630_vm1, %v586_v8  ;;  %v594_v29 = vpack.c.bf16 %v575_v25, %v574_v16 }
 0x104   : > { %v471_v12 = vpop.f32.mrb[13].mxu0  ;;  %1709 = vmatmul.mubr.msk.bf16.gmra.mrb[24].mxu1 %vm630_vm1, %v587_v6  ;;  %v564_v18 = vmax.f32 %v1674_v10, 0.0 }
 0x105   : > { %v1675_v15 = vpop.f32.mrb[14].mxu0  ;;  %v562_v23 = vmax.f32 %v471_v12, 0.0  ;;  %v1690_v30 = vpop.f32.mrb[12].mxu1 }
 0x106   : > { %v565_v19 = vmax.f32 %v1675_v15, 0.0  ;;  %v474_v20 = vpop.f32.mrb[15].mxu0  ;;  %v580_v31 = vmax.f32 %v1690_v30, 0.0  ;;  %v535_v32 = vpop.f32.mrb[13].mxu1 }
 0x107   : > { %v563_v24 = vmax.f32 %v474_v20, 0.0  ;;  %v578_v33 = vmax.f32 %v535_v32, 0.0  ;;  %v1691_v34 = vpop.f32.mrb[14].mxu1 }
 0x108   : > { %v589_v26 = vpack.c.bf16 %v565_v19, %v564_v18  ;;  %v581_v35 = vmax.f32 %v1691_v34, 0.0  ;;  %v538_v36 = vpop.f32.mrb[15].mxu1 }
 0x109   : > { %v588_v28 = vpack.c.bf16 %v563_v24, %v562_v23  ;;  %v579_v37 = vmax.f32 %v538_v36, 0.0 }
 0x10a   : > { %v597_v38 = vpack.c.bf16 %v581_v35, %v580_v31 }
 0x10b   : > { %1712 = vmatprep.mubr.msk.bf16.mxu1 %vm630_vm1, %v588_v28  ;;  %v596_v39 = vpack.c.bf16 %v579_v37, %v578_v33 }
 0x10c   : > { %1713 = vmatmul.mubr.msk.bf16.gmra.mrb[28].mxu1 %vm630_vm1, %v589_v26 }
 0x10d   : > { %1716 = vmatprep.mubr.msk.bf16.mxu1 %vm630_vm1, %v590_v53 }
 0x114   : > { %1717 = vmatmul.mubr.msk.bf16.gmra.mrb[32].mxu1 %vm630_vm1, %v591_v51 }
 0x115   : > { %1720 = vmatprep.mubr.msk.bf16.mxu1 %vm630_vm1, %v592_v9 }
 0x11c   : > { %1721 = vmatmul.mubr.msk.bf16.gmra.mrb[36].mxu1 %vm630_vm1, %v593_v7 }
 0x11d   : > { %1724 = vmatprep.mubr.msk.bf16.mxu1 %vm630_vm1, %v594_v29 }
 0x124   : > { %1725 = vmatmul.mubr.msk.bf16.gmra.mrb[40].mxu1 %vm630_vm1, %v595_v27 }
 0x125   : > { %1728 = vmatprep.mubr.msk.bf16.mxu1 %vm630_vm1, %v596_v39 }
 0x12c   : > { %1729 = vmatmul.mubr.msk.bf16.gmra.mrb[44].mxu1 %vm630_vm1, %v597_v38 }
 0x1c7   : > { %v1702_v41 = vpop.f32.mrb[16].mxu1 }
 0x1c8   : > { %v713_v42 = vpop.f32.mrb[17].mxu1  ;;  %v842_v44 = vmax.f32 %v1702_v41, 0.0 }
 0x1c9   : > { %v1703_v43 = vpop.f32.mrb[18].mxu1  ;;  %v840_v47 = vmax.f32 %v713_v42, 0.0 }
 0x1ca   : > { %v843_v45 = vmax.f32 %v1703_v43, 0.0  ;;  %v716_v46 = vpop.f32.mrb[19].mxu1 }
 0x1cb   : > { %v841_v48 = vmax.f32 %v716_v46, 0.0 }
 0x1cc   : > { %v873_v49 = vpack.c.bf16 %v843_v45, %v842_v44 }
 0x1cd   : > { %v872_v50 = vpack.c.bf16 %v841_v48, %v840_v47 }
 0x1cf   : > { %v1706_v51 = vpop.f32.mrb[20].mxu1  ;;  %1740 = vmatprep.mubr.msk.bf16.mxu0 %vm630_vm1, %v872_v50 }
 0x1d0   : > { %v729_v52 = vpop.f32.mrb[21].mxu1  ;;  %1741 = vmatmul.mubr.msk.bf16.vlgmr.msra.gmra.mrb[16].mxu0 %vm630_vm1, %v873_v49  ;;  %v846_v54 = vmax.f32 %v1706_v51, 0.0 }
 0x1d1   : > { %v1707_v53 = vpop.f32.mrb[22].mxu1  ;;  %v844_v57 = vmax.f32 %v729_v52, 0.0 }
 0x1d2   : > { %v847_v55 = vmax.f32 %v1707_v53, 0.0  ;;  %v732_v56 = vpop.f32.mrb[23].mxu1 }
 0x1d3   : > { %v845_v58 = vmax.f32 %v732_v56, 0.0 }
 0x1d4   : > { %v875_v59 = vpack.c.bf16 %v847_v55, %v846_v54 }
 0x1d5   : > { %v874_v60 = vpack.c.bf16 %v845_v58, %v844_v57 }
 0x1d7   : > { %v1710_v61 = vpop.f32.mrb[24].mxu1  ;;  %1744 = vmatprep.mubr.msk.bf16.mxu0 %vm630_vm1, %v874_v60 }
 0x1d8   : > { %v745_v62 = vpop.f32.mrb[25].mxu1  ;;  %1745 = vmatmul.mubr.msk.bf16.gmra.mrb[20].mxu0 %vm630_vm1, %v875_v59  ;;  %v850_v0 = vmax.f32 %v1710_v61, 0.0 }
 0x1d9   : > { %v1711_v63 = vpop.f32.mrb[26].mxu1  ;;  %v848_v3 = vmax.f32 %v745_v62, 0.0 }
 0x1da   : > { %v851_v1 = vmax.f32 %v1711_v63, 0.0  ;;  %v748_v2 = vpop.f32.mrb[27].mxu1 }
 0x1db   : > { %v849_v4 = vmax.f32 %v748_v2, 0.0 }
 0x1dc   : > { %v877_v5 = vpack.c.bf16 %v851_v1, %v850_v0 }
 0x1dd   : > { %v876_v6 = vpack.c.bf16 %v849_v4, %v848_v3 }
 0x1df   : > { %v1714_v7 = vpop.f32.mrb[28].mxu1  ;;  %1748 = vmatprep.mubr.msk.bf16.mxu0 %vm630_vm1, %v876_v6 }
 0x1e0   : > { %v761_v8 = vpop.f32.mrb[29].mxu1  ;;  %1749 = vmatmul.mubr.msk.bf16.gmra.mrb[24].mxu0 %vm630_vm1, %v877_v5  ;;  %v854_v10 = vmax.f32 %v1714_v7, 0.0 }
 0x1e1   : > { %v1715_v9 = vpop.f32.mrb[30].mxu1  ;;  %v852_v13 = vmax.f32 %v761_v8, 0.0 }
 0x1e2   : > { %v855_v11 = vmax.f32 %v1715_v9, 0.0  ;;  %v764_v12 = vpop.f32.mrb[31].mxu1 }
 0x1e3   : > { %v853_v14 = vmax.f32 %v764_v12, 0.0 }
 0x1e4   : > { %v879_v15 = vpack.c.bf16 %v855_v11, %v854_v10 }
 0x1e5   : > { %v878_v16 = vpack.c.bf16 %v853_v14, %v852_v13 }
 0x1e7   : > { %v1718_v17 = vpop.f32.mrb[32].mxu1  ;;  %1752 = vmatprep.mubr.msk.bf16.mxu0 %vm630_vm1, %v878_v16 }
 0x1e8   : > { %v777_v18 = vpop.f32.mrb[33].mxu1  ;;  %1753 = vmatmul.mubr.msk.bf16.gmra.mrb[28].mxu0 %vm630_vm1, %v879_v15  ;;  %v858_v20 = vmax.f32 %v1718_v17, 0.0 }
 0x1e9   : > { %v1719_v19 = vpop.f32.mrb[34].mxu1  ;;  %v856_v23 = vmax.f32 %v777_v18, 0.0 }
 0x1ea   : > { %v859_v21 = vmax.f32 %v1719_v19, 0.0  ;;  %v780_v22 = vpop.f32.mrb[35].mxu1 }
 0x1eb   : > { %v857_v24 = vmax.f32 %v780_v22, 0.0 }
 0x1ec   : > { %v881_v25 = vpack.c.bf16 %v859_v21, %v858_v20 }
 0x1ed   : > { %v880_v26 = vpack.c.bf16 %v857_v24, %v856_v23 }
 0x1ef   : > { %v1722_v27 = vpop.f32.mrb[36].mxu1  ;;  %1756 = vmatprep.mubr.msk.bf16.mxu0 %vm630_vm1, %v880_v26 }
 0x1f0   : > { %v793_v28 = vpop.f32.mrb[37].mxu1  ;;  %1757 = vmatmul.mubr.msk.bf16.gmra.mrb[32].mxu0 %vm630_vm1, %v881_v25  ;;  %v862_v30 = vmax.f32 %v1722_v27, 0.0 }
 0x1f1   : > { %v1723_v29 = vpop.f32.mrb[38].mxu1  ;;  %v860_v33 = vmax.f32 %v793_v28, 0.0 }
 0x1f2   : > { %v863_v31 = vmax.f32 %v1723_v29, 0.0  ;;  %v796_v32 = vpop.f32.mrb[39].mxu1 }
 0x1f3   : > { %v861_v34 = vmax.f32 %v796_v32, 0.0 }
 0x1f4   : > { %v883_v35 = vpack.c.bf16 %v863_v31, %v862_v30 }
 0x1f5   : > { %v882_v36 = vpack.c.bf16 %v861_v34, %v860_v33 }
 0x1f7   : > { %v1726_v37 = vpop.f32.mrb[40].mxu1  ;;  %1760 = vmatprep.mubr.msk.bf16.mxu0 %vm630_vm1, %v882_v36 }
 0x1f8   : > { %v809_v38 = vpop.f32.mrb[41].mxu1  ;;  %1761 = vmatmul.mubr.msk.bf16.gmra.mrb[36].mxu0 %vm630_vm1, %v883_v35  ;;  %v866_v40 = vmax.f32 %v1726_v37, 0.0 }
 0x1f9   : > { %v1727_v39 = vpop.f32.mrb[42].mxu1  ;;  %v864_v43 = vmax.f32 %v809_v38, 0.0 }
 0x1fa   : > { %v867_v41 = vmax.f32 %v1727_v39, 0.0  ;;  %v812_v42 = vpop.f32.mrb[43].mxu1 }
 0x1fb   : > { %v865_v44 = vmax.f32 %v812_v42, 0.0 }
 0x1fc   : > { %v885_v45 = vpack.c.bf16 %v867_v41, %v866_v40 }
 0x1fd   : > { %v884_v46 = vpack.c.bf16 %v865_v44, %v864_v43 }
 0x1ff   : > { %v1730_v47 = vpop.f32.mrb[44].mxu1  ;;  %1764 = vmatprep.mubr.msk.bf16.mxu0 %vm630_vm1, %v884_v46 }
 0x200   : > { %v825_v48 = vpop.f32.mrb[45].mxu1  ;;  %1765 = vmatmul.mubr.msk.bf16.gmra.mrb[40].mxu0 %vm630_vm1, %v885_v45  ;;  %v870_v50 = vmax.f32 %v1730_v47, 0.0 }
 0x201   : > { %v1731_v49 = vpop.f32.mrb[46].mxu1  ;;  %v868_v53 = vmax.f32 %v825_v48, 0.0 }
 0x202   : > { %v871_v51 = vmax.f32 %v1731_v49, 0.0  ;;  %v828_v52 = vpop.f32.mrb[47].mxu1 }
 0x203   : > { %v869_v54 = vmax.f32 %v828_v52, 0.0 }
 0x204   : > { %v887_v55 = vpack.c.bf16 %v871_v51, %v870_v50 }
 0x205   : > { %v886_v56 = vpack.c.bf16 %v869_v54, %v868_v53 }
 0x207   : > { %1768 = vmatprep.mubr.msk.bf16.mxu0 %vm630_vm1, %v886_v56 }
 0x208   : > { %1769 = vmatmul.mubr.msk.bf16.gmra.mrb[44].mxu0 %vm630_vm1, %v887_v55 }
 0x2a3   : > { %v1742_v57 = vpop.f32.mrb[16].mxu0 }
 0x2a4   : > { %1132 = vst.msk [vmem:[%s2131_s5 + $0x10] sm:$0xff] %vm1129_vm2, %v1742_v57  ;;  %v1002_v58 = vpop.f32.mrb[17].mxu0 }
 0x2a5   : > { %1130 = vst.msk [vmem:[%s2131_s5] sm:$0xff] %vm1129_vm2, %v1002_v58  ;;  %v1743_v59 = vpop.f32.mrb[18].mxu0 }
 0x2a6   : > { %1133 = vst.msk [vmem:[%s2131_s5 + $0x18] sm:$0xff] %vm1129_vm2, %v1743_v59  ;;  %v1005_v60 = vpop.f32.mrb[19].mxu0 }
 0x2a7   : > { %1131 = vst.msk [vmem:[%s2131_s5 + $0x8] sm:$0xff] %vm1129_vm2, %v1005_v60 }
 0x2ab   : > { %v1746_v61 = vpop.f32.mrb[20].mxu0 }
 0x2ac   : > { %1136 = vst.msk [vmem:[%s2131_s5 + $0x30] sm:$0xff] %vm1129_vm2, %v1746_v61  ;;  %v1018_v62 = vpop.f32.mrb[21].mxu0 }
 0x2ad   : > { %1134 = vst.msk [vmem:[%s2131_s5 + $0x20] sm:$0xff] %vm1129_vm2, %v1018_v62  ;;  %v1747_v63 = vpop.f32.mrb[22].mxu0 }
 0x2ae   : > { %1137 = vst.msk [vmem:[%s2131_s5 + $0x38] sm:$0xff] %vm1129_vm2, %v1747_v63  ;;  %v1021_v0 = vpop.f32.mrb[23].mxu0 }
 0x2af   : > { %1135 = vst.msk [vmem:[%s2131_s5 + $0x28] sm:$0xff] %vm1129_vm2, %v1021_v0 }
 0x2b3   : > { %v1750_v1 = vpop.f32.mrb[24].mxu0 }
 0x2b4   : > { %1140 = vst.msk [vmem:[%s2131_s5 + $0x50] sm:$0xff] %vm1129_vm2, %v1750_v1  ;;  %v1034_v2 = vpop.f32.mrb[25].mxu0 }
 0x2b5   : > { %1138 = vst.msk [vmem:[%s2131_s5 + $0x40] sm:$0xff] %vm1129_vm2, %v1034_v2  ;;  %v1751_v3 = vpop.f32.mrb[26].mxu0 }
 0x2b6   : > { %1141 = vst.msk [vmem:[%s2131_s5 + $0x58] sm:$0xff] %vm1129_vm2, %v1751_v3  ;;  %v1037_v4 = vpop.f32.mrb[27].mxu0 }
 0x2b7   : > { %1139 = vst.msk [vmem:[%s2131_s5 + $0x48] sm:$0xff] %vm1129_vm2, %v1037_v4 }
 0x2bb   : > { %v1754_v5 = vpop.f32.mrb[28].mxu0 }
 0x2bc   : > { %1144 = vst.msk [vmem:[%s2131_s5 + $0x70] sm:$0xff] %vm1129_vm2, %v1754_v5  ;;  %v1050_v6 = vpop.f32.mrb[29].mxu0 }
 0x2bd   : > { %1142 = vst.msk [vmem:[%s2131_s5 + $0x60] sm:$0xff] %vm1129_vm2, %v1050_v6  ;;  %v1755_v7 = vpop.f32.mrb[30].mxu0 }
 0x2be   : > { %1145 = vst.msk [vmem:[%s2131_s5 + $0x78] sm:$0xff] %vm1129_vm2, %v1755_v7  ;;  %v1053_v8 = vpop.f32.mrb[31].mxu0 }
 0x2bf   : > { %1143 = vst.msk [vmem:[%s2131_s5 + $0x68] sm:$0xff] %vm1129_vm2, %v1053_v8 }
 0x2c3   : > { %v1758_v9 = vpop.f32.mrb[32].mxu0 }
 0x2c4   : > { %1148 = vst.msk [vmem:[%s2131_s5 + $0x90] sm:$0xff] %vm1129_vm2, %v1758_v9  ;;  %v1066_v10 = vpop.f32.mrb[33].mxu0 }
 0x2c5   : > { %1146 = vst.msk [vmem:[%s2131_s5 + $0x80] sm:$0xff] %vm1129_vm2, %v1066_v10  ;;  %v1759_v11 = vpop.f32.mrb[34].mxu0 }
 0x2c6   : > { %1149 = vst.msk [vmem:[%s2131_s5 + $0x98] sm:$0xff] %vm1129_vm2, %v1759_v11  ;;  %v1069_v12 = vpop.f32.mrb[35].mxu0 }
 0x2c7   : > { %1147 = vst.msk [vmem:[%s2131_s5 + $0x88] sm:$0xff] %vm1129_vm2, %v1069_v12 }
 0x2cb   : > { %v1762_v13 = vpop.f32.mrb[36].mxu0 }
 0x2cc   : > { %1152 = vst.msk [vmem:[%s2131_s5 + $0xb0] sm:$0xff] %vm1129_vm2, %v1762_v13  ;;  %v1082_v14 = vpop.f32.mrb[37].mxu0 }
 0x2cd   : > { %1150 = vst.msk [vmem:[%s2131_s5 + $0xa0] sm:$0xff] %vm1129_vm2, %v1082_v14  ;;  %v1763_v15 = vpop.f32.mrb[38].mxu0 }
 0x2ce   : > { %1153 = vst.msk [vmem:[%s2131_s5 + $0xb8] sm:$0xff] %vm1129_vm2, %v1763_v15  ;;  %v1085_v16 = vpop.f32.mrb[39].mxu0 }
 0x2cf   : > { %1151 = vst.msk [vmem:[%s2131_s5 + $0xa8] sm:$0xff] %vm1129_vm2, %v1085_v16 }
 0x2d3   : > { %v1766_v17 = vpop.f32.mrb[40].mxu0 }
 0x2d4   : > { %1156 = vst.msk [vmem:[%s2131_s5 + $0xd0] sm:$0xff] %vm1129_vm2, %v1766_v17  ;;  %v1098_v18 = vpop.f32.mrb[41].mxu0 }
 0x2d5   : > { %1154 = vst.msk [vmem:[%s2131_s5 + $0xc0] sm:$0xff] %vm1129_vm2, %v1098_v18  ;;  %v1767_v19 = vpop.f32.mrb[42].mxu0 }
 0x2d6   : > { %1157 = vst.msk [vmem:[%s2131_s5 + $0xd8] sm:$0xff] %vm1129_vm2, %v1767_v19  ;;  %v1101_v20 = vpop.f32.mrb[43].mxu0 }
 0x2d7   : > { %1155 = vst.msk [vmem:[%s2131_s5 + $0xc8] sm:$0xff] %vm1129_vm2, %v1101_v20 }
 0x2d9   : > { %1168 = sbr.rel (!%p2025_p4) target bundleno = 792 (0x318), region = 40 }
 0x2db   : > { %v1770_v21 = vpop.f32.mrb[44].mxu0 }
 0x2dc   : > { %1160 = vst.msk [vmem:[%s2131_s5 + $0xf0] sm:$0xff] %vm1129_vm2, %v1770_v21  ;;  %v1114_v22 = vpop.f32.mrb[45].mxu0 }
 0x2dd   : > { %1158 = vst.msk [vmem:[%s2131_s5 + $0xe0] sm:$0xff] %vm1129_vm2, %v1114_v22  ;;  %v1771_v23 = vpop.f32.mrb[46].mxu0 }
 0x2de   : > { %1161 = vst.msk [vmem:[%s2131_s5 + $0xf8] sm:$0xff] %vm1129_vm2, %v1771_v23  ;;  %v1117_v24 = vpop.f32.mrb[47].mxu0 }
 0x2df   : > { %1159 = vst.msk [vmem:[%s2131_s5 + $0xe8] sm:$0xff] %vm1129_vm2, %v1117_v24 }
 0x2e0   : > { %s2351_s15 = smov (!%p1171_p8, %s1170_s15), 32 }
 0x2e1   : > { %s1583_s10 = sshll.u32 %s2351_s15, 7 }
 0x2e2   : > { %p1586_p9 = scmp.eq.s32.totalorder %s1583_s10, 0 }
 0x2e3   : > { %s2210_s11 = sshrl.u32 (!%p1586_p9), %s2351_s15, 5 }
 0x2e4   : > { %1179 = sbr.rel (%p1586_p9) target bundleno = 792 (0x318), region = 44  ;;  %p1587_p10 = scmp.le.s32.totalorder (!%p1586_p9), %s2210_s11, 0 }
 0x2eb   : > { %1457 = sbr.rel (%p1587_p10) target bundleno = 771 (0x303), region = 120  ;;  %s2342_s18 = smov (!%p1587_p10), %s2204_s9 }
 0x2ec   : > { %s2343_s23 = smov (!%p1587_p10), %s2131_s5  ;;  %s2219_s26 = smov (!%p1587_p10), 0  }
 0x2ed   : > { %s2221_s12 = smov (!%p1587_p10), 0  }
 0x2f2 LB: >> { %v1303_v25 = vld [vmem:[%s1949_s23] sm:$0xff]  ;;  %v1305_v26 = vld [vmem:[%s1949_s23 + $0x8] sm:$0xff]  ;;  %v1307_v27 = vld [vmem:[%s1949_s23 + $0x10] sm:$0xff]  ;;  %s1367_s13 = sadd.s32 1, %s1953_s26  ;;  %s1297_s12 = sadd.s32 1, %s1957_s12   ;;  %s1957_s12 = sphi %s2221_s12, %s1297_s12   ;;  %s1953_s26 = sphi %s2219_s26, %s2346_s26   ;;  %s1949_s23 = sphi %s2343_s23, %s2345_s23   ;;  %s1945_s18 = sphi %s2342_s18, %s2344_s18  }
 0x2f3   : >> { %1304 = vst [vmem:[%s1945_s18] sm:$0xff] %v1303_v25  ;;  %1306 = vst [vmem:[%s1945_s18 + $0x8] sm:$0xff] %v1305_v26  ;;  %v1309_v28 = vld [vmem:[%s1949_s23 + $0x18] sm:$0xff]  ;;  %v1311_v29 = vld [vmem:[%s1949_s23 + $0x20] sm:$0xff]  ;;  %p1368_p11 = scmp.ge.s32.totalorder %s1367_s13, %s2210_s11  ;;  %p1296_p12 = scmp.ge.s32.totalorder %s1297_s12, %s2210_s11 }
 0x2f4   : >> { %1308 = vst [vmem:[%s1945_s18 + $0x10] sm:$0xff] %v1307_v27  ;;  %v1313_v30 = vld [vmem:[%s1949_s23 + $0x28] sm:$0xff]  ;;  %1310 = vst [vmem:[%s1945_s18 + $0x18] sm:$0xff] %v1309_v28  ;;  %v1315_v31 = vld [vmem:[%s1949_s23 + $0x30] sm:$0xff] }
 0x2f5   : >> { %1312 = vst [vmem:[%s1945_s18 + $0x20] sm:$0xff] %v1311_v29  ;;  %1314 = vst [vmem:[%s1945_s18 + $0x28] sm:$0xff] %v1313_v30  ;;  %v1317_v32 = vld [vmem:[%s1949_s23 + $0x38] sm:$0xff]  ;;  %v1319_v33 = vld [vmem:[%s1949_s23 + $0x40] sm:$0xff]  ;;  %s2353_s13 = smov (%p1368_p11, %s1367_s13), 0 }
 0x2f6   : >> { %1316 = vst [vmem:[%s1945_s18 + $0x30] sm:$0xff] %v1315_v31  ;;  %1318 = vst [vmem:[%s1945_s18 + $0x38] sm:$0xff] %v1317_v32  ;;  %v1321_v34 = vld [vmem:[%s1949_s23 + $0x48] sm:$0xff]  ;;  %v1323_v35 = vld [vmem:[%s1949_s23 + $0x50] sm:$0xff]  ;;  %s1588_s14 = sshll.u32 %s2353_s13, 8  ;;  %s2346_s26 = smov %s2353_s13 }
 0x2f7   : >> { %1320 = vst [vmem:[%s1945_s18 + $0x40] sm:$0xff] %v1319_v33  ;;  %v1325_v36 = vld [vmem:[%s1949_s23 + $0x58] sm:$0xff]  ;;  %1322 = vst [vmem:[%s1945_s18 + $0x48] sm:$0xff] %v1321_v34  ;;  %v1327_v37 = vld [vmem:[%s1949_s23 + $0x60] sm:$0xff]  ;;  %s2277_s17 = scalar_lea.vmem %s2131_s5, %s1588_s14 [#allocation2]   ;;  %s1373_s20 = scalar_lea.vmem %s2204_s9, %s1588_s14  }
 0x2f8   : >> { %1324 = vst [vmem:[%s1945_s18 + $0x50] sm:$0xff] %v1323_v35  ;;  %1326 = vst [vmem:[%s1945_s18 + $0x58] sm:$0xff] %v1325_v36  ;;  %v1329_v38 = vld [vmem:[%s1949_s23 + $0x68] sm:$0xff]  ;;  %v1331_v39 = vld [vmem:[%s1949_s23 + $0x70] sm:$0xff] }
 0x2f9   : >> { %1328 = vst [vmem:[%s1945_s18 + $0x60] sm:$0xff] %v1327_v37  ;;  %1330 = vst [vmem:[%s1945_s18 + $0x68] sm:$0xff] %v1329_v38  ;;  %v1333_v40 = vld [vmem:[%s1949_s23 + $0x78] sm:$0xff]  ;;  %v1335_v41 = vld [vmem:[%s1949_s23 + $0x80] sm:$0xff] }
 0x2fa   : >> { %1332 = vst [vmem:[%s1945_s18 + $0x70] sm:$0xff] %v1331_v39  ;;  %v1337_v42 = vld [vmem:[%s1949_s23 + $0x88] sm:$0xff]  ;;  %1334 = vst [vmem:[%s1945_s18 + $0x78] sm:$0xff] %v1333_v40  ;;  %v1339_v43 = vld [vmem:[%s1949_s23 + $0x90] sm:$0xff] }
 0x2fb   : >> { %1336 = vst [vmem:[%s1945_s18 + $0x80] sm:$0xff] %v1335_v41  ;;  %1338 = vst [vmem:[%s1945_s18 + $0x88] sm:$0xff] %v1337_v42  ;;  %v1341_v44 = vld [vmem:[%s1949_s23 + $0x98] sm:$0xff]  ;;  %v1343_v45 = vld [vmem:[%s1949_s23 + $0xa0] sm:$0xff] }
 0x2fc   : >> { %1340 = vst [vmem:[%s1945_s18 + $0x90] sm:$0xff] %v1339_v43  ;;  %1342 = vst [vmem:[%s1945_s18 + $0x98] sm:$0xff] %v1341_v44  ;;  %v1345_v46 = vld [vmem:[%s1949_s23 + $0xa8] sm:$0xff]  ;;  %v1347_v47 = vld [vmem:[%s1949_s23 + $0xb0] sm:$0xff]  ;;  %1299 = sbr.rel (!%p1296_p12) target bundleno = 754 (0x2f2), region = 126 }
 0x2fd   : >> { %1344 = vst [vmem:[%s1945_s18 + $0xa0] sm:$0xff] %v1343_v45  ;;  %v1349_v48 = vld [vmem:[%s1949_s23 + $0xb8] sm:$0xff]  ;;  %1346 = vst [vmem:[%s1945_s18 + $0xa8] sm:$0xff] %v1345_v46  ;;  %v1351_v49 = vld [vmem:[%s1949_s23 + $0xc0] sm:$0xff] }
 0x2fe   : >> { %1348 = vst [vmem:[%s1945_s18 + $0xb0] sm:$0xff] %v1347_v47  ;;  %1350 = vst [vmem:[%s1945_s18 + $0xb8] sm:$0xff] %v1349_v48  ;;  %v1353_v50 = vld [vmem:[%s1949_s23 + $0xc8] sm:$0xff]  ;;  %v1355_v51 = vld [vmem:[%s1949_s23 + $0xd0] sm:$0xff] }
 0x2ff   : >> { %1352 = vst [vmem:[%s1945_s18 + $0xc0] sm:$0xff] %v1351_v49  ;;  %1354 = vst [vmem:[%s1945_s18 + $0xc8] sm:$0xff] %v1353_v50  ;;  %v1357_v52 = vld [vmem:[%s1949_s23 + $0xd8] sm:$0xff]  ;;  %v1359_v53 = vld [vmem:[%s1949_s23 + $0xe0] sm:$0xff] }
 0x300   : >> { %1356 = vst [vmem:[%s1945_s18 + $0xd0] sm:$0xff] %v1355_v51  ;;  %v1361_v54 = vld [vmem:[%s1949_s23 + $0xe8] sm:$0xff]  ;;  %1358 = vst [vmem:[%s1945_s18 + $0xd8] sm:$0xff] %v1357_v52  ;;  %v1363_v55 = vld [vmem:[%s1949_s23 + $0xf0] sm:$0xff] }
 0x301   : >> { %1360 = vst [vmem:[%s1945_s18 + $0xe0] sm:$0xff] %v1359_v53  ;;  %1362 = vst [vmem:[%s1945_s18 + $0xe8] sm:$0xff] %v1361_v54  ;;  %v1365_v56 = vld [vmem:[%s1949_s23 + $0xf8] sm:$0xff]  ;;  %s2345_s23 = smov %s2277_s17 }
 0x302   : >> { %1364 = vst [vmem:[%s1945_s18 + $0xf0] sm:$0xff] %v1363_v55  ;;  %1366 = vst [vmem:[%s1945_s18 + $0xf8] sm:$0xff] %v1365_v56  ;;  %s2344_s18 = smov %s1373_s20 }
 0x303 PF: > { %s2318_s21 = sand.u32 31, %s2351_s15   ;;  %s1599_s24 = sshll.u32 %s2210_s11, 8 }
 0x304   : > { %s1378_s25 = scalar_lea.vmem %s2131_s5, %s1599_s24 [#allocation2]   ;;  %s1380_s27 = scalar_lea.vmem %s2204_s9, %s1599_s24  }
 0x305   : > { %p1593_p13 = scmp.le.s32.totalorder %s2318_s21, 0 }
 0x306   : > { %s1959_s28 = smov (!%p1593_p13), %s1380_s27   ;;  %s1963_s29 = smov (!%p1593_p13), %s1378_s25  }
 0x307   : > { %1471 = sbr.rel (%p1593_p13) target bundleno = 792 (0x318), region = 131  ;;  %s1967_s30 = smov (!%p1593_p13), 0  }
 0x308   : > { %s1971_s6 = smov (!%p1593_p13), 0  }
 0x30e LB: >> { %v1390_v57 = vld [vmem:[%s1965_s29] sm:$0xff]  ;;  %s1392_s15 = sadd.s32 1, %s1969_s30  ;;  %s1384_s6 = sadd.s32 1, %s1973_s6   ;;  %s1973_s6 = sphi %s1971_s6, %s1384_s6   ;;  %s1969_s30 = sphi %s1967_s30, %s1968_s30   ;;  %s1965_s29 = sphi %s1963_s29, %s1397_s29   ;;  %s1961_s28 = sphi %s1959_s28, %s1398_s28  }
 0x30f   : >> { %1391 = vst [vmem:[%s1961_s28] sm:$0xff] %v1390_v57  ;;  %p1393_p0 = scmp.ge.s32.totalorder %s1392_s15, %s2318_s21  ;;  %p1383_p1 = scmp.ge.s32.totalorder %s1384_s6, %s2318_s21 }
 0x311   : >> { %s2355_s15 = smov (%p1393_p0, %s1392_s15), 0  ;;  %1386 = sbr.rel (!%p1383_p1) target bundleno = 782 (0x30e), region = 137 }
 0x312   : >> { %s1594_s5 = sshll.u32 %s2355_s15, 3  ;;  %s1968_s30 = smov %s2355_s15  }
 0x313   : >> { %s1397_s29 = scalar_lea.vmem %s1378_s25, %s1594_s5 [#allocation2]   ;;  %s1398_s28 = scalar_lea.vmem %s1380_s27, %s1594_s5  }
 0x318 PF: > { %p11_p2 = scmp.ge.s32.totalorder %s2015_s19, 4   ;;  %s2347_s15 = smov %s1937_s16 }
 0x319   : > { %s2348_s16 = smov %s2023_s22  ;;  %s2349_s17 = smov %s2015_s19 }
 0x31a   :  { %13 = sbr.rel (!%p11_p2) target bundleno = 2 (0x2), region = 148 }

</bundles_post_ra>
